<compile_context>
chip_gen: v7x
topology: tpu7x:2x2x1
jax: 0.10.0
libtpu: 0.0.40
codegen_flags: <defaults>
</compile_context>

<pallas_src>
import functools

import jax
import jax.numpy as jnp
from jax.experimental import pallas as pl
from jax.experimental.pallas import tpu as pltpu

W_DEFAULT = 0.00145  # module default

# One lane-dense (8, 128) partial-sum block per tile; the wrapper readback
# (out[0, ::_OUT_LANES]) is tied to these constants.
_OUT_ROWS = 8
_OUT_LANES = 128


def _round_up(x, m):
    return ((x + m - 1) // m) * m


def _device_kind():
    try:
        return jax.devices()[0].device_kind.lower()
    except Exception:
        return ""


def _vmem_capacity_bytes():
    """Per-core VMEM capacity; conservative (v7x-sized) fallback if unknown."""
    try:
        info = pltpu.get_tpu_info()
        cap = getattr(info, "vmem_capacity_bytes", None)
        if cap:
            return int(cap)
    except Exception:
        pass
    return 64 * 1024 * 1024


def _choose_tile_n(n, c, itemsize, vmem_budget):
    """Largest 8-aligned TILE_N whose *live* footprint fits the budget.

    Live bytes/row: 2x double-buffered native input row + ~3 (TILE_N, C) f32
    temporaries (upcast, shifted, exp) + the double-buffered int32 label col.
    """
    per_row = c * (2 * itemsize + 3 * 4) + 2 * 4
    tile_n = max(8, vmem_budget // per_row)
    tile_n = min(tile_n, 8192, _round_up(n, 8))   # 8192: review-suggested ceiling
    return int((tile_n // 8) * 8)


def _ce_partial_kernel(preds_ref, labels_ref, out_ref, *,
                       tile_n, n_total, scale, native_reduce):
    i = pl.program_id(0)

    x = preds_ref[...]                                   # (TILE_N, C) native dtype
    labels = labels_ref[...]                             # (TILE_N, 1) int32

    # Mask rows of the (possibly ragged) last tile that fall past global N.
    row_ids = i * tile_n + jax.lax.broadcasted_iota(jnp.int32, (tile_n, 1), 0)
    valid = row_ids < n_total                             # (TILE_N, 1)

    # (1, C) iota broadcast against (TILE_N, 1) labels -> no full-tile iota.
    cls_ids = jax.lax.broadcasted_iota(jnp.int32, (1, x.shape[-1]), 1)
    onehot = cls_ids == labels                            # (TILE_N, C) bool

    if native_reduce:
        # Row max and one-hot pick only copy existing values -> exact in the
        # native (packed) dtype; bf16 packs 2 rows/vreg on v6e/v7x VALU.
        m32 = jnp.max(x, axis=-1, keepdims=True).astype(jnp.float32)
        picked32 = jnp.sum(jnp.where(onehot, x, 0),
                           axis=-1, keepdims=True).astype(jnp.float32)
        shifted = x.astype(jnp.float32) - m32             # (TILE_N, C) f32
    else:
        x32 = x.astype(jnp.float32)
        m32 = jnp.max(x32, axis=-1, keepdims=True)
        picked32 = jnp.sum(jnp.where(onehot, x32, 0.0), axis=-1, keepdims=True)
        shifted = x32 - m32

    sumexp = jnp.sum(jnp.exp(shifted), axis=-1, keepdims=True)  # (TILE_N, 1)
    ce = m32 + jnp.log(sumexp) - picked32                       # (TILE_N, 1)
    # Padded rows read unspecified data; where() selects per-element, so any
    # NaN/Inf produced there is dropped here (see header note).
    ce = jnp.where(valid, ce, 0.0)

    part = scale * jnp.sum(ce, axis=0, keepdims=True)     # (1, 1), scale = 1 - w
    out_ref[...] = jnp.broadcast_to(part, out_ref.shape)  # lane-dense (8,128) write


def simple_comp_loss(preds, labels, gammas, sup_labels, *,
                     w=W_DEFAULT, tile_n=None, core_parallel=None):
    """preds: [N, C] logits (any float dtype, streamed in native dtype);
    labels: [N] int; gammas, sup_labels: [N] floats.
    Returns the scalar mean SimpleCompLoss."""
    n, c = preds.shape
    itemsize = jnp.dtype(preds.dtype).itemsize
    labels2d = labels.reshape(n, 1).astype(jnp.int32)

    vmem_cap = _vmem_capacity_bytes()
    if tile_n is None:
        tile_n = _choose_tile_n(n, c, itemsize, int(0.70 * vmem_cap))
    else:
        tile_n = int(max(8, (min(int(tile_n), _round_up(n, 8)) // 8) * 8))
    num_tiles = int(pl.cdiv(n, tile_n))

    kind = _device_kind()
    # Native-dtype max / label-pick only where a packed-dtype VALU exists.
    native_reduce = itemsize < 4 and ("v6" in kind or "v7" in kind)
    # Only core-level semantics split the grid across v7x's two TensorCores;
    # keep the known-good "parallel" on single-TC parts.
    if core_parallel is None:
        core_parallel = ("v7" in kind
                         and hasattr(pltpu, "CORE_PARALLEL")
                         and num_tiles >= 2)
    dim_sem = (pltpu.CORE_PARALLEL,) if core_parallel else ("parallel",)

    kernel = functools.partial(
        _ce_partial_kernel, tile_n=tile_n, n_total=n,
        scale=float(1.0 - w), native_reduce=bool(native_reduce))

    cost = pl.CostEstimate(
        flops=int(5 * n * c + 8 * n),
        transcendentals=int(n * c + n),
        bytes_accessed=int(n * c * itemsize + 4 * n
                           + 4 * _OUT_ROWS * _OUT_LANES * num_tiles),
    )

    out = pl.pallas_call(
        kernel,
        out_shape=jax.ShapeDtypeStruct((_OUT_ROWS, _OUT_LANES * num_tiles),
                                       jnp.float32),
        grid=(num_tiles,),
        in_specs=[
            pl.BlockSpec((tile_n, c), lambda i: (i, 0)),   # preds, native dtype
            pl.BlockSpec((tile_n, 1), lambda i: (i, 0)),   # labels
        ],
        out_specs=pl.BlockSpec((_OUT_ROWS, _OUT_LANES), lambda i: (0, i)),
        compiler_params=pltpu.CompilerParams(
            dimension_semantics=dim_sem,
            vmem_limit_bytes=int(0.85 * vmem_cap),
        ),
        cost_estimate=cost,
    )(preds, labels2d)

    # Every element of tile i's (8, 128) block holds that tile's partial
    # (1 - w) * sum(ce); pick one per tile (stride = _OUT_LANES).
    partials = out[0, ::_OUT_LANES]                        # (num_tiles,)
    ce_sum = jnp.sum(partials)

    # O(N) BCE-with-logits term lives in the wrapper (moved out of the kernel).
    g = gammas.astype(jnp.float32)
    y = sup_labels.astype(jnp.float32)
    bce = jnp.maximum(g, 0.0) - g * y + jnp.log1p(jnp.exp(-jnp.abs(g)))

    return (ce_sum + jnp.float32(w) * jnp.sum(bce)) / jnp.float32(n)


def _reference(preds, labels, gammas, sup_labels, w=W_DEFAULT):
    # pure-JAX reference of the same math (CE + BCE-with-logits, mean)
    lse = jax.nn.logsumexp(preds.astype(jnp.float32), axis=-1)
    picked = jnp.take_along_axis(
        preds.astype(jnp.float32), labels[:, None], axis=-1)[:, 0]
    ce = lse - picked
    g = gammas.astype(jnp.float32)
    y = sup_labels.astype(jnp.float32)
    bce = jnp.maximum(g, 0.0) - g * y + jnp.log1p(jnp.exp(-jnp.abs(g)))
    return jnp.mean((1.0 - w) * ce + w * bce)


if __name__ == "__main__":
    key = jax.random.PRNGKey(0)
    ks = jax.random.split(key, 12)

    # --- Test 1: small batch, single tile, f32, auto tile sizing ---
    N, C = 8, 32
    preds = jax.random.normal(ks[0], (N, C), dtype=jnp.float32)
    labels = jax.random.randint(ks[1], (N,), 0, C, dtype=jnp.int32)
    gammas = jax.random.normal(ks[2], (N,), dtype=jnp.float32)
    sup_labels = jax.random.bernoulli(ks[3], 0.5, (N,)).astype(jnp.float32)

    out = simple_comp_loss(preds, labels, gammas, sup_labels)
    jax.block_until_ready(out)
    ref = _reference(preds, labels, gammas, sup_labels)
    assert jnp.allclose(out, ref, rtol=1e-5, atol=1e-5), (out, ref)

    # --- Test 2: multi-tile grid with a ragged last tile (forced tile_n=8) ---
    N2, C2 = 20, 32
    preds2 = jax.random.normal(ks[4], (N2, C2), dtype=jnp.float32)
    labels2 = jax.random.randint(ks[5], (N2,), 0, C2, dtype=jnp.int32)
    gammas2 = jax.random.normal(ks[6], (N2,), dtype=jnp.float32)
    sup2 = jax.random.bernoulli(ks[7], 0.5, (N2,)).astype(jnp.float32)

    out2 = simple_comp_loss(preds2, labels2, gammas2, sup2, tile_n=8)
    jax.block_until_ready(out2)
    ref2 = _reference(preds2, labels2, gammas2, sup2)
    assert jnp.allclose(out2, ref2, rtol=1e-5, atol=1e-5), (out2, ref2)

    # --- Test 3: bf16 logits, multi-tile (exercises native max/pick on v6e/v7x,
    #             f32 fallback path on v5e) ---
    N3, C3 = 24, 64
    preds3 = jax.random.normal(ks[8], (N3, C3), dtype=jnp.float32).astype(jnp.bfloat16)
    labels3 = jax.random.randint(ks[9], (N3,), 0, C3, dtype=jnp.int32)
    gammas3 = jax.random.normal(ks[10], (N3,), dtype=jnp.float32)
    sup3 = jax.random.bernoulli(ks[11], 0.5, (N3,)).astype(jnp.float32)

    out3 = simple_comp_loss(preds3, labels3, gammas3, sup3, tile_n=8)
    jax.block_until_ready(out3)
    ref3 = _reference(preds3, labels3, gammas3, sup3)
    assert jnp.allclose(out3, ref3, rtol=1e-5, atol=1e-5), (out3, ref3)

    print("KERNEL_OK")
</pallas_src>

<mosaic_0001>
module attributes {stable_mosaic.version = 11 : i64} {
  func.func @_ce_partial_kernel(%arg0: i32, %arg1: memref<8x32xf32, #tpu.memory_space<vmem>>, %arg2: memref<8x1xi32, #tpu.memory_space<vmem>>, %arg3: memref<8x128xf32, #tpu.memory_space<vmem>>) attributes {dimension_semantics = [#tpu.dimension_semantics<parallel>], iteration_bounds = array<i64: 1>, scalar_prefetch = 0 : i64, scratch_operands = 0 : i64, tpu.core_type = #tpu.core_type<tc>, window_params = [{transform_indices = @transform_0, window_bounds = array<i64: 8, 32>}, {transform_indices = @transform_1, window_bounds = array<i64: 8, 1>}, {transform_indices = @transform_2, window_bounds = array<i64: 8, 128>}]} {
    %c0 = arith.constant 0 : index
    %c0_0 = arith.constant 0 : index
    %0 = vector.load %arg1[%c0, %c0_0] : memref<8x32xf32, #tpu.memory_space<vmem>>, vector<8x32xf32>
    %c0_1 = arith.constant 0 : index
    %c0_2 = arith.constant 0 : index
    %1 = vector.load %arg2[%c0_1, %c0_2] : memref<8x1xi32, #tpu.memory_space<vmem>>, vector<8x1xi32>
    %c8_i32 = arith.constant 8 : i32
    %2 = arith.muli %arg0, %c8_i32 : i32
    %3 = tpu.iota {dimensions = array<i32: 0>} : vector<8x1xi32>
    %4 = vector.broadcast %2 : i32 to vector<8x1xi32>
    %5 = arith.addi %4, %3 : vector<8x1xi32>
    %c8_i32_3 = arith.constant 8 : i32
    %6 = vector.broadcast %c8_i32_3 : i32 to vector<8x1xi32>
    %7 = arith.cmpi slt, %5, %6 : vector<8x1xi32>
    %8 = tpu.iota {dimensions = array<i32: 1>} : vector<1x32xi32>
    %9 = vector.broadcast %8 : vector<1x32xi32> to vector<8x32xi32>
    %10 = vector.broadcast %1 : vector<8x1xi32> to vector<8x32xi32>
    %11 = arith.cmpi eq, %9, %10 : vector<8x32xi32>
    %cst = arith.constant dense<0xFF800000> : vector<8xf32>
    %12 = vector.multi_reduction <maximumf>, %0, %cst [1] : vector<8x32xf32> to vector<8xf32>
    %13 = vector.shape_cast %12 : vector<8xf32> to vector<8x1xf32>
    %cst_4 = arith.constant 0.000000e+00 : f32
    %14 = vector.broadcast %cst_4 : f32 to vector<8x32xf32>
    %15 = arith.select %11, %0, %14 : vector<8x32xi1>, vector<8x32xf32>
    %cst_5 = arith.constant dense<0.000000e+00> : vector<8xf32>
    %16 = vector.multi_reduction <add>, %15, %cst_5 [1] : vector<8x32xf32> to vector<8xf32>
    %17 = vector.shape_cast %16 : vector<8xf32> to vector<8x1xf32>
    %18 = vector.broadcast %13 : vector<8x1xf32> to vector<8x32xf32>
    %19 = arith.subf %0, %18 : vector<8x32xf32>
    %20 = math.exp %19 : vector<8x32xf32>
    %cst_6 = arith.constant dense<0.000000e+00> : vector<8xf32>
    %21 = vector.multi_reduction <add>, %20, %cst_6 [1] : vector<8x32xf32> to vector<8xf32>
    %22 = vector.shape_cast %21 : vector<8xf32> to vector<8x1xf32>
    %23 = math.log %22 : vector<8x1xf32>
    %24 = arith.addf %13, %23 : vector<8x1xf32>
    %25 = arith.subf %24, %17 : vector<8x1xf32>
    %cst_7 = arith.constant 0.000000e+00 : f32
    %26 = vector.broadcast %cst_7 : f32 to vector<8x1xf32>
    %27 = arith.select %7, %25, %26 : vector<8x1xi1>, vector<8x1xf32>
    %cst_8 = arith.constant dense<0.000000e+00> : vector<1xf32>
    %28 = vector.multi_reduction <add>, %27, %cst_8 [0] : vector<8x1xf32> to vector<1xf32>
    %29 = vector.shape_cast %28 : vector<1xf32> to vector<1x1xf32>
    %cst_9 = arith.constant 0.998549997 : f32
    %30 = vector.broadcast %cst_9 : f32 to vector<1x1xf32>
    %31 = arith.mulf %30, %29 : vector<1x1xf32>
    %32 = vector.shape_cast %31 : vector<1x1xf32> to vector<1x1xf32>
    %33 = vector.broadcast %32 : vector<1x1xf32> to vector<8x128xf32>
    %c0_10 = arith.constant 0 : index
    %c0_11 = arith.constant 0 : index
    %34 = vector.load %arg3[%c0_10, %c0_11] : memref<8x128xf32, #tpu.memory_space<vmem>>, vector<8x128xf32>
    tpu.vector_store %arg3[%c0_10, %c0_11], %33 {strides = array<i32>} : memref<8x128xf32, #tpu.memory_space<vmem>>, vector<8x128xf32>,
    return
  }
  func.func @transform_0(%arg0: i32) -> (i32, i32) {
    %c0_i32 = arith.constant 0 : i32
    %c0_i32_0 = arith.constant 0 : i32
    return %arg0, %c0_i32 : i32, i32
  }
  func.func @transform_1(%arg0: i32) -> (i32, i32) {
    %c0_i32 = arith.constant 0 : i32
    %c0_i32_0 = arith.constant 0 : i32
    return %arg0, %c0_i32 : i32, i32
  }
  func.func @transform_2(%arg0: i32) -> (i32, i32) {
    %c0_i32 = arith.constant 0 : i32
    %c0_i32_0 = arith.constant 0 : i32
    return %c0_i32, %arg0 : i32, i32
  }
}

</mosaic_0001>

<bundles_post_ra>
// kernel: tpu_custom_call.1
= control target key start
LH: loop header
LB: loop body
LE: loop exit
PB: predicated region body
PF: predicated region fallthrough
CT: control target
= control target key end

     0   :  { %vm26_vm0 = vcmask 261120   ;;  %s136_s0 = inlined_call_operand.vmem [shape: f32[8,32], index: 0, kind: input, shape index: {}]   ;;  %s137_s1 = inlined_call_operand.vmem [shape: s32[8,1], index: 1, kind: input, shape index: {}]   ;;  %s138_s2 = inlined_call_operand.hbm [shape: f32[8,128], index: 2, kind: output, shape index: {}]  }
   0x1   :  { %v12_v0 = vld [vmem:[%s136_s0] sm:$0xff] }
   0x2   :  { %7 = vsyncpa [#allocation3], 0  ;;  %v27_v1 = vsel %vm26_vm0, %v12_v0, -inf  ;;  %v98_v2 = vmov 0   ;;  %v13_v3 = vld [vmem:[%s137_s1] sm:$0xff]  ;;  %v20_v7 = vlaneseq  ;;  %s99_s0 = smov [#allocation2]  }
   0x3   :  { %69 = vset.pattern.permute.xlu0 %v98_v2  ;;  %s59_s1 = sshll.u32 %s99_s0, 4  ;;  %s60_s1 = int_to_ptr.vmem [resolvable:$true] %s59_s1 }
   0x4   :  { %28 = vmax.xlane.f32.xlu0 %v27_v1  ;;  %v21_v8 = vand.u32 127, %v20_v7  ;;  %s74_s13 = scalar_lea.vmem %s60_s1, 128  ;;  %p79_p1 = scmp.lt.s32.totalorder %s60_s1, %s60_s1 }
   0x5   :  { %p75_p0 = scmp.ne.s32.totalorder %s60_s1, %s74_s13  ;;  %p80_p2 = scmp.lt.s32.totalorder %s74_s13, %s74_s13 }
   0x7   :  { %p81_p3 = por %p80_p2, %p79_p1 }
   0x9   :  { %p82_p4 = pnand %p81_p3, %p75_p0 }
  0x1a   :  { %23 = vperm.xlu0 %69, %v13_v3  }
  0x91   :  { %v29_v4 = vpop.xlane.xlu0 %28 }
  0x92   :  { %v34_v5 = vsub.f32 %v12_v0, %v29_v4 }
  0x94   :  { %v35_v6 = vmul.f32 1.442695, %v34_v5 }
  0x96   :  { %70 = vpow2.f32 %v35_v6 }
  0x99   :  { %v24_v9 = vpop.permute.xlu0 %23 }
  0x9a   :  { %vm25_vm1 = vcmp.eq.s32.totalorder %v21_v8, %v24_v9 }
  0x9b   :  { %v30_v11 = vsel %vm25_vm1, %v12_v0, 0.0 }
  0x9c   :  { %v31_v13 = vsel %vm26_vm0, %v30_v11, 0.0 }
  0xa0   :  { %v71_v10 = vpop.eup %70 }
  0xa1   :  { %v37_v12 = vsel %vm26_vm0, %v71_v10, 0.0 }
  0xa2   :  { %38 = vadd.xlane.f32.xlu1 %v37_v12 }
  0xa6   :  { %32 = vadd.xlane.f32.xlu1 %v31_v13 }
 0x12f   :  { %v39_v14 = vpop.xlane.xlu1 %38 }
 0x130   :  { %72 = vlog2.f32 %v39_v14 }
 0x133   :  { %v33_v17 = vpop.xlane.xlu1 %32 }
 0x13a   :  { %v73_v15 = vpop.eup %72 }
 0x13b   :  { %v41_v16 = vmul.f32 0.6931472, %v73_v15 }
 0x13d   :  { %v42_v18 = vadd.f32 %v41_v16, %v29_v4 }
 0x13f   :  { %v43_v19 = vsub.f32 %v42_v18, %v33_v17 }
 0x141   :  { %v45_v20 = vrot.slane %v43_v19, 4 }
 0x143   :  { %v46_v21 = vadd.f32 %v45_v20, %v43_v19 }
 0x145   :  { %v47_v22 = vrot.slane %v46_v21, 2 }
 0x147   :  { %v48_v23 = vadd.f32 %v47_v22, %v46_v21 }
 0x149   :  { %v49_v24 = vrot.slane %v48_v23, 1 }
 0x14b   :  { %v50_v25 = vadd.f32 %v49_v24, %v48_v23 }
 0x14d   :  { %v51_v26 = vmul.f32 0.99855, %v50_v25 }
 0x14f   :  { %52 = vst [vmem:[#allocation2] sm:$0xff] %v51_v26 }
 0x150   :  { %85 = shalt.err (!%p82_p4)
}
 0x151   :  { %s86_s16 = scalar_lea.hbm %s138_s2, 128 }
 0x152   :  { %p87_p5 = scmp.ne.s32.totalorder %s138_s2, %s86_s16  ;;  %p90_p6 = scmp.lt.u32.totalorder %s86_s16, %s138_s2 }
 0x154   :  { %p92_p7 = pnand %p90_p6, %p87_p5 }
 0x156   :  { %95 = shalt.err (!%p92_p7)
}
 0x157   :  { %62 = dma.vmem_to_hbm [thread:$0]  %s60_s1, 128, %s138_s2, [#allocation3]  }
 0x158   :  { %96 = dma.done.wait [#allocation3], 128  }
 0x159   :  { %97 = vsyncadd [#allocation3], 4294967168 }
 0x15a   :  { %66 = vsyncpa [#allocation3], 1 }

</bundles_post_ra>
